<compile_context>
chip_gen: v6e
topology: v6e:2x2x1
jax: 0.10.0
libtpu: 0.0.40
codegen_flags: <defaults>
</compile_context>

<pallas_src>
import jax
import jax.numpy as jnp
from jax.experimental import pallas as pl
from jax.experimental.pallas import tpu as pltpu


_SUBLANE = 32                         # safe second-minor multiple for f32/bf16/int8/fp8
_TARGET_TILE_BYTES = 4 * 1024 * 1024  # ~4 MiB per operand tile (== 8192 rows x 128 lanes f32)
_VMEM_LIMIT_BYTES = 48 * 1024 * 1024  # 3 operands x 2 bufs x 4 MiB = 24 MiB + headroom;
                                      # fits v7x's 64 MiB/TC, overrides v5e's 16 MiB default


def _add2d_kernel(a_ref, b_ref, o_ref):
    # a_ref / b_ref / o_ref: [TM, C] tiles of the collapsed operands.
    o_ref[...] = a_ref[...] + b_ref[...]


def _choose_tile_rows(rows, cols, itemsize):
    """Row-tile size: ~4 MiB per operand, 32-sublane aligned, and >= 2 grid steps
    whenever the row count allows it (so both v7x TensorCores get work)."""
    row_bytes = max(cols * itemsize, 1)
    cap = max(_SUBLANE, (_TARGET_TILE_BYTES // row_bytes) // _SUBLANE * _SUBLANE)
    if rows <= _SUBLANE:
        return rows                              # single full-extent block (always legal)
    half = pl.cdiv(pl.cdiv(rows, 2), _SUBLANE) * _SUBLANE
    return max(_SUBLANE, min(cap, half))


def _pallas_add_2d(a2d, b2d):
    """Element-wise add of two [R, C] slabs, tiled over rows with a 1-D grid."""
    R, C = a2d.shape
    itemsize = jnp.dtype(a2d.dtype).itemsize
    tm = _choose_tile_rows(R, C, itemsize)
    grid = (pl.cdiv(R, tm),)                     # ragged last block is masked by Pallas
    tile_spec = pl.BlockSpec((tm, C), lambda i: (i, 0))

    cost = pl.CostEstimate(
        flops=R * C,                             # one add per element
        transcendentals=0,
        bytes_accessed=3 * R * C * itemsize,     # 2 reads + 1 write
    )

    return pl.pallas_call(
        _add2d_kernel,
        out_shape=jax.ShapeDtypeStruct((R, C), a2d.dtype),
        grid=grid,
        in_specs=[tile_spec, tile_spec],
        out_specs=tile_spec,
        compiler_params=pltpu.CompilerParams(
            dimension_semantics=("parallel",),   # megacore sharding on v7x
            vmem_limit_bytes=_VMEM_LIMIT_BYTES,
        ),
        cost_estimate=cost,
    )(a2d, b2d)


def add2d_forward(x1, x1_len, x2, x2_len):
    """Add2D: (x1, x1_len, x2, x2_len) -> (x1 + x2, x1_len).

    x1, x2: [batch, seq, hidden] (any rank >= 1) with identical shape/dtype;
    the first length tensor is passed through untouched.
    """
    assert x1.shape == x2.shape, "Add2D requires identically-shaped inputs"
    assert x1.dtype == x2.dtype, "Add2D requires identical dtypes"
    del x2_len  # second operand's length is unused (passthrough of the first)

    orig_shape = x1.shape
    C = orig_shape[-1]
    R = x1.size // C

    # Collapse leading dims only (last dim untouched). No padding / slicing:
    # a non-multiple-of-128 hidden dim simply uses a full-width (masked-store) block.
    a2d = x1.reshape(R, C)
    b2d = x2.reshape(R, C)

    y2d = _pallas_add_2d(a2d, b2d)
    return y2d.reshape(orig_shape), x1_len


def _ref_forward(x1, x1_len, x2, x2_len):
    return x1 + x2, x1_len


if __name__ == "__main__":
    key = jax.random.PRNGKey(0)

    # --- Small-shape check (single full-extent block, narrow hidden dim) -------
    B, S, H = 2, 8, 32
    k1, k2, key = jax.random.split(key, 3)
    x1 = jax.random.normal(k1, (B, S, H), dtype=jnp.float32)
    x2 = jax.random.normal(k2, (B, S, H), dtype=jnp.float32)
    x1_len = jnp.array([8, 5], dtype=jnp.int32)
    x2_len = jnp.array([8, 5], dtype=jnp.int32)

    out, out_len = add2d_forward(x1, x1_len, x2, x2_len)
    out = jax.block_until_ready(out)
    ref, ref_len = _ref_forward(x1, x1_len, x2, x2_len)
    assert out.shape == (B, S, H)
    assert jnp.allclose(out, ref, atol=1e-6, rtol=1e-6), "mismatch vs. reference (small)"
    assert jnp.array_equal(out_len, ref_len), "length passthrough mismatch"

    # --- Multi-tile check (lane-dense hidden, 2-step row grid) -----------------
    B2, S2, H2 = 4, 512, 256
    k3, k4, key = jax.random.split(key, 3)
    y1 = jax.random.normal(k3, (B2, S2, H2), dtype=jnp.float32)
    y2 = jax.random.normal(k4, (B2, S2, H2), dtype=jnp.float32)
    y_len = jnp.full((B2,), S2, dtype=jnp.int32)
    out2, _ = add2d_forward(y1, y_len, y2, y_len)
    out2 = jax.block_until_ready(out2)
    assert jnp.allclose(out2, y1 + y2, atol=1e-6, rtol=1e-6), "mismatch vs. reference (tiled)"

    # --- Ragged check (rows not divisible by tile, hidden not multiple of 128) -
    B3, S3, H3 = 3, 100, 96
    k5, k6, key = jax.random.split(key, 3)
    z1 = jax.random.normal(k5, (B3, S3, H3), dtype=jnp.float32)
    z2 = jax.random.normal(k6, (B3, S3, H3), dtype=jnp.float32)
    z_len = jnp.full((B3,), S3, dtype=jnp.int32)
    out3, _ = add2d_forward(z1, z_len, z2, z_len)
    out3 = jax.block_until_ready(out3)
    assert jnp.allclose(out3, z1 + z2, atol=1e-6, rtol=1e-6), "mismatch vs. reference (ragged)"

    # --- bf16 check (16-row sublane packing must be satisfied by 32-row tiles) -
    B4, S4, H4 = 2, 64, 256
    k7, k8, _ = jax.random.split(key, 3)
    w1 = jax.random.normal(k7, (B4, S4, H4), dtype=jnp.float32).astype(jnp.bfloat16)
    w2 = jax.random.normal(k8, (B4, S4, H4), dtype=jnp.float32).astype(jnp.bfloat16)
    w_len = jnp.full((B4,), S4, dtype=jnp.int32)
    out4, _ = add2d_forward(w1, w_len, w2, w_len)
    out4 = jax.block_until_ready(out4)
    assert jnp.allclose(out4.astype(jnp.float32), (w1 + w2).astype(jnp.float32),
                        atol=1e-2, rtol=1e-2), "mismatch vs. reference (bf16)"

    print("KERNEL_OK")
</pallas_src>

<mosaic_0001>
module attributes {stable_mosaic.version = 11 : i64} {
  func.func @_add2d_kernel(%arg0: i32, %arg1: memref<16x32xf32, #tpu.memory_space<vmem>>, %arg2: memref<16x32xf32, #tpu.memory_space<vmem>>, %arg3: memref<16x32xf32, #tpu.memory_space<vmem>>) attributes {dimension_semantics = [#tpu.dimension_semantics<parallel>], iteration_bounds = array<i64: 1>, scalar_prefetch = 0 : i64, scratch_operands = 0 : i64, tpu.core_type = #tpu.core_type<tc>, window_params = [{transform_indices = @transform_0, window_bounds = array<i64: 16, 32>}, {transform_indices = @transform_1, window_bounds = array<i64: 16, 32>}, {transform_indices = @transform_2, window_bounds = array<i64: 16, 32>}]} {
    %c0 = arith.constant 0 : index
    %c0_0 = arith.constant 0 : index
    %0 = vector.load %arg1[%c0, %c0_0] : memref<16x32xf32, #tpu.memory_space<vmem>>, vector<16x32xf32>
    %c0_1 = arith.constant 0 : index
    %c0_2 = arith.constant 0 : index
    %1 = vector.load %arg2[%c0_1, %c0_2] : memref<16x32xf32, #tpu.memory_space<vmem>>, vector<16x32xf32>
    %2 = arith.addf %0, %1 : vector<16x32xf32>
    %c0_3 = arith.constant 0 : index
    %c0_4 = arith.constant 0 : index
    %3 = vector.load %arg3[%c0_3, %c0_4] : memref<16x32xf32, #tpu.memory_space<vmem>>, vector<16x32xf32>
    tpu.vector_store %arg3[%c0_3, %c0_4], %2 {strides = array<i32>} : memref<16x32xf32, #tpu.memory_space<vmem>>, vector<16x32xf32>,
    return
  }
  func.func @transform_0(%arg0: i32) -> (i32, i32) {
    %c0_i32 = arith.constant 0 : i32
    %c0_i32_0 = arith.constant 0 : i32
    return %arg0, %c0_i32 : i32, i32
  }
  func.func @transform_1(%arg0: i32) -> (i32, i32) {
    %c0_i32 = arith.constant 0 : i32
    %c0_i32_0 = arith.constant 0 : i32
    return %arg0, %c0_i32 : i32, i32
  }
  func.func @transform_2(%arg0: i32) -> (i32, i32) {
    %c0_i32 = arith.constant 0 : i32
    %c0_i32_0 = arith.constant 0 : i32
    return %arg0, %c0_i32 : i32, i32
  }
}

</mosaic_0001>

<bundles_post_ra>
// kernel: tpu_custom_call.1
= control target key start
LH: loop header
LB: loop body
LE: loop exit
PB: predicated region body
PF: predicated region fallthrough
CT: control target
= control target key end

     0   :  { %7 = vsyncpa [#allocation3], 0  ;;  %s176_s0 = inlined_call_operand.hbm [shape: f32[16,32], index: 0, kind: input, shape index: {}]   ;;  %s177_s1 = inlined_call_operand.hbm [shape: f32[16,32], index: 1, kind: input, shape index: {}]   ;;  %s178_s2 = inlined_call_operand.hbm [shape: f32[16,32], index: 2, kind: output, shape index: {}]  }
   0x1   :  { %8 = vsyncpa [#allocation6], 0 }
   0x2   :  { %9 = vsyncpa [#allocation4], 0  ;;  %s138_s9 = smov [#allocation2]  }
   0x3   :  { %s15_s10 = sshll.u32 %s138_s9, 4  ;;  %s16_s10 = int_to_ptr.vmem [resolvable:$true] %s15_s10 }
   0x4   :  { %s80_s11 = scalar_lea.vmem %s16_s10, 256  ;;  %p85_p1 = scmp.lt.s32.totalorder %s16_s10, %s16_s10 }
   0x5   :  { %p81_p0 = scmp.ne.s32.totalorder %s16_s10, %s80_s11  ;;  %p86_p2 = scmp.lt.s32.totalorder %s80_s11, %s80_s11 }
   0x7   :  { %p87_p3 = por %p86_p2, %p85_p1 }
   0x9   :  { %p88_p4 = pnand %p87_p3, %p81_p0 }
   0xb   :  { %91 = shalt.err (!%p88_p4)
}
   0xc   :  { %s139_s12 = smov 128   ;;  %s140_s13 = smov 8  }
   0xd   :  { %21 = dma.hbm_to_vmem [thread:$0]  %s176_s0, 256, %s16_s10, [#allocation3], %s139_s12, %s139_s12, %s140_s13  }
   0xe   :  { %s141_s16 = smov [#allocation5]  }
   0xf   :  { %s27_s17 = sshll.u32 %s141_s16, 4  ;;  %s28_s17 = int_to_ptr.vmem [resolvable:$true] %s27_s17 }
  0x10   :  { %s100_s18 = scalar_lea.vmem %s28_s17, 256  ;;  %p105_p6 = scmp.lt.s32.totalorder %s28_s17, %s28_s17 }
  0x11   :  { %p101_p5 = scmp.ne.s32.totalorder %s28_s17, %s100_s18  ;;  %p106_p7 = scmp.lt.s32.totalorder %s100_s18, %s100_s18 }
  0x13   :  { %p107_p8 = por %p106_p7, %p105_p6 }
  0x15   :  { %p108_p9 = pnand %p107_p8, %p101_p5 }
  0x17   :  { %111 = shalt.err (!%p108_p9)
}
  0x18   :  { %33 = dma.hbm_to_vmem [thread:$0]  %s177_s1, 256, %s28_s17, [#allocation6], %s139_s12, %s139_s12, %s140_s13  }
  0x19   :  { %132 = dma.done.wait [#allocation3], 256  }
  0x1a   :  { %133 = vsyncadd [#allocation3], 4294967040 }
  0x1b   :  { %134 = dma.done.wait [#allocation6], 256  }
  0x1c   :  { %135 = vsyncadd [#allocation6], 4294967040  ;;  %s142_s0 = smov [#allocation7]   ;;  %v40_v0 = vld [vmem:[#allocation2] sm:$0xff]  ;;  %v42_v1 = vld [vmem:[#allocation5] sm:$0xff]  ;;  %vm46_vm0 = vcmask 261120  }
  0x1d   :  { %s54_s21 = sshll.u32 %s142_s0, 4  ;;  %v41_v2 = vld [vmem:[#allocation2 + $0x8] sm:$0xff]  ;;  %v44_v3 = vadd.f32 %v42_v1, %v40_v0  ;;  %v43_v4 = vld [vmem:[#allocation5 + $0x8] sm:$0xff]  ;;  %s55_s21 = int_to_ptr.vmem [resolvable:$true] %s54_s21 }
  0x1e   :  { %v45_v5 = vadd.f32 %v43_v4, %v41_v2  ;;  %s112_s22 = scalar_lea.vmem %s55_s21, 256  ;;  %p117_p11 = scmp.lt.s32.totalorder %s55_s21, %s55_s21 }
  0x1f   :  { %47 = vst.msk [vmem:[#allocation7] sm:$0xff] %vm46_vm0, %v44_v3  ;;  %p113_p10 = scmp.ne.s32.totalorder %s55_s21, %s112_s22  ;;  %p118_p12 = scmp.lt.s32.totalorder %s112_s22, %s112_s22 }
  0x20   :  { %48 = vst.msk [vmem:[#allocation7 + $0x8] sm:$0xff] %vm46_vm0, %v45_v5 }
  0x21   :  { %p119_p13 = por %p118_p12, %p117_p11 }
  0x23   :  { %p120_p0 = pnand %p119_p13, %p113_p10 }
  0x25   :  { %123 = shalt.err (!%p120_p0)
}
  0x26   :  { %60 = dma.vmem_to_hbm [thread:$0]  %s55_s21, 256, %s178_s2, [#allocation4], %s139_s12, %s139_s12, %s140_s13  }
  0x27   :  { %136 = dma.done.wait [#allocation4], 256  }
  0x28   :  { %137 = vsyncadd [#allocation4], 4294967040 }
  0x29   :  { %64 = vsyncpa [#allocation3], 1 }
  0x2a   :  { %65 = vsyncpa [#allocation6], 1 }
  0x2b   :  { %66 = vsyncpa [#allocation4], 1 }

</bundles_post_ra>
